<compile_context>
chip_gen: v6e
topology: v6e:2x2x1
jax: 0.10.0
libtpu: 0.0.40
codegen_flags: <defaults>
</compile_context>

<pallas_src>
from typing import NamedTuple

import jax
import jax.numpy as jnp
from jax.experimental import pallas as pl
from jax.experimental.pallas import tpu as pltpu

LANE = 128     # lane width  (last-dim tiling quantum)
SUBLANE = 8    # sublane width (second-to-last-dim tiling quantum)


def _round_up(x: int, m: int) -> int:
    return (x + m - 1) // m * m


def _cdiv(a: int, b: int) -> int:
    return -(-a // b)


# --------------------------------------------------------------------------
# Generation-aware VMEM budgeting
# --------------------------------------------------------------------------
def _vmem_capacity_bytes() -> int:
    try:
        info = pltpu.get_tpu_info()
        cap = getattr(info, "vmem_capacity_bytes", None)
        if cap:
            return int(cap)
    except Exception:
        pass
    return 64 * 1024 * 1024          # conservative fallback (v7x-sized VMEM)


def _vmem_budget_bytes():
    """Returns (tiling budget, hard cap for vmem_limit_bytes)."""
    cap = _vmem_capacity_bytes()
    # Always leave headroom for compiler internal scratch / semaphores.
    hard_cap = max(cap - 6 * 1024 * 1024, cap * 7 // 8)
    if cap >= 96 * 1024 * 1024:       # v5e / v6e: 128 MiB physical VMEM
        budget = min(hard_cap, 108 * 1024 * 1024)
    else:                             # v7x (64 MiB) or unknown
        budget = min(hard_cap, 52 * 1024 * 1024)
    return budget, hard_cap


def _tile_footprint_bytes(tm, th, in_pad, out_pad, cbytes, x_bytes, o_bytes):
    """VMEM bytes for one grid step with double-buffered BlockSpec tiles."""
    return (2 * tm * in_pad * x_bytes          # x tile
            + 2 * in_pad * th * cbytes         # W1 tile
            + 2 * th * out_pad * cbytes        # W2 tile
            + 2 * SUBLANE * th * 4             # b1 tile (f32, sublane-padded)
            + 2 * SUBLANE * out_pad * 4        # b2 tile (f32, sublane-padded)
            + 2 * tm * out_pad * o_bytes       # output tile
            + tm * out_pad * 4)                # f32 accumulator scratch


def _select_tiles(in_pad, hid_base, out_pad, cbytes, tm_max, th_max, budget):
    """Pick (th, tm_cap) so double-buffered tiles fit the VMEM budget.

    th candidates (multiples of 128) are ranked by (padded hidden work,
    step count): minimize dead fc1/fc2 flops from hidden padding first, then
    take the largest feasible tile (fewest per-step overheads and fewest
    accumulator RMW passes).  If nothing fits, shrink the batch tile cap.
    """
    th_hi = max(LANE, min(_round_up(th_max, LANE), hid_base))
    cands = sorted(range(LANE, th_hi + 1, LANE),
                   key=lambda t: (_round_up(hid_base, t), -t))
    tm_cap = max(SUBLANE, _round_up(tm_max, SUBLANE))
    while True:
        for th in cands:
            if _tile_footprint_bytes(tm_cap, th, in_pad, out_pad,
                                     cbytes, 4, 4) <= budget:
                return th, tm_cap
        if tm_cap == SUBLANE:
            # Degenerate (enormous in/out dims): fall back to minimum tiles.
            # TODO(synk): add an output-dim grid axis if out_pad >= 8K ever
            # forces th/tm down this far.
            return LANE, SUBLANE
        tm_cap = max(SUBLANE, _round_up(tm_cap // 2, SUBLANE))


def _choose_batch_tile(batch: int, tm_cap: int) -> int:
    """Balanced batch tile: padding waste is at most 7 rows total."""
    if batch <= tm_cap:
        return max(SUBLANE, _round_up(batch, SUBLANE))
    n_tiles = _cdiv(batch, tm_cap)
    return _round_up(_cdiv(batch, n_tiles), SUBLANE)


# --------------------------------------------------------------------------
# Kernel: one (batch-tile, hidden-tile) step of  relu(x @ W1 + b1) @ W2 + b2
# --------------------------------------------------------------------------
def expert_kernel(x_ref, w1_ref, b1_ref, w2_ref, b2_ref, o_ref, acc_ref):
    h_idx = pl.program_id(1)

    # fc1 tile: (tm, in_pad) @ (in_pad, th) -> (tm, th) with f32 accumulation.
    # Input is cast on-chip (VPU) so the wrapper never rewrites x in HBM.
    x = x_ref[...]
    if x.dtype != w1_ref.dtype:
        x = x.astype(w1_ref.dtype)
    h = jnp.dot(x, w1_ref[...], preferred_element_type=jnp.float32)
    h = jnp.maximum(h + b1_ref[...], 0.0)

    # fc2 partial: (tm, th) @ (th, out_pad), accumulated across hidden tiles.
    # For bf16 weights the fc1 activation is downcast to bf16 (standard mixed
    # precision); accumulation stays f32.  For f32 weights no downcast happens.
    h_in = h if w2_ref.dtype == jnp.float32 else h.astype(w2_ref.dtype)

    @pl.when(h_idx == 0)
    def _first():
        # Skip the separate zero-init pass: write the first partial directly.
        acc_ref[...] = jnp.dot(h_in, w2_ref[...],
                               preferred_element_type=jnp.float32)

    @pl.when(h_idx > 0)
    def _accumulate():
        # Keep the `acc += dot(...)` form: v7x's MRB can accumulate in-place.
        acc_ref[...] += jnp.dot(h_in, w2_ref[...],
                                preferred_element_type=jnp.float32)

    @pl.when(h_idx == pl.num_programs(1) - 1)
    def _finalize():
        o_ref[...] = (acc_ref[...] + b2_ref[...]).astype(o_ref.dtype)


# --------------------------------------------------------------------------
# One-time parameter preparation (transpose + pad + tile selection)
# --------------------------------------------------------------------------
class ExpertParams(NamedTuple):
    w1_t: jax.Array    # (in_pad, hid_pad)   == W1.T, zero-padded, compute dtype
    b1: jax.Array      # (1, hid_pad), float32
    w2_t: jax.Array    # (hid_pad, out_pad)  == W2.T, zero-padded, compute dtype
    b2: jax.Array      # (1, out_pad), float32
    in_dim: int
    out_dim: int
    th: int            # hidden tile (multiple of 128, divides hid_pad)
    tm_cap: int        # largest batch tile the VMEM budget allows


def prepare_expert_params(w1, b1, w2, b2, *, compute_dtype=jnp.bfloat16,
                          tm_max=None, th_max=None) -> ExpertParams:
    """w1: (hidden, in), b1: (hidden,), w2: (out, hidden), b2: (out,).

    One-time work (transpose, cast, lane padding, generation-aware tile
    selection).  Keep the result and reuse it across forward calls.
    """
    hid, in_dim = w1.shape
    out_dim = w2.shape[0]
    dtype = jnp.dtype(compute_dtype)
    cbytes = dtype.itemsize

    in_pad = _round_up(in_dim, LANE)
    out_pad = _round_up(out_dim, LANE)
    hid_base = _round_up(hid, LANE)

    budget, _ = _vmem_budget_bytes()
    big_vmem = budget >= 96 * 1024 * 1024
    if tm_max is None:
        tm_max = 512                        # keep weight re-streaming compute-bound
    if th_max is None:
        th_max = 2048 if big_vmem else 1024

    th, tm_cap = _select_tiles(in_pad, hid_base, out_pad, cbytes,
                               tm_max, th_max, budget)
    hid_pad = _round_up(hid_base, th)

    w1_t = jnp.zeros((in_pad, hid_pad), dtype).at[:in_dim, :hid].set(
        w1.T.astype(dtype))
    b1_p = jnp.zeros((1, hid_pad), jnp.float32).at[0, :hid].set(
        b1.astype(jnp.float32))
    w2_t = jnp.zeros((hid_pad, out_pad), dtype).at[:hid, :out_dim].set(
        w2.T.astype(dtype))
    b2_p = jnp.zeros((1, out_pad), jnp.float32).at[0, :out_dim].set(
        b2.astype(jnp.float32))

    return ExpertParams(w1_t, b1_p, w2_t, b2_p, in_dim, out_dim, th, tm_cap)


# --------------------------------------------------------------------------
# Forward pass
# --------------------------------------------------------------------------
def expert_forward(x, params: ExpertParams, *, out_dtype=None):
    B, in_dim = x.shape
    assert in_dim == params.in_dim, "input feature dim mismatch"

    in_pad, hid_pad = params.w1_t.shape
    out_pad = params.w2_t.shape[1]
    th = params.th
    cdtype = params.w1_t.dtype
    odtype = jnp.dtype(out_dtype) if out_dtype is not None else x.dtype

    tm = _choose_batch_tile(B, params.tm_cap)
    grid_b = _cdiv(B, tm)
    B_pad = grid_b * tm

    # Only touch x in HBM when alignment forces it (lane / batch zero-padding);
    # dtype conversion happens on-chip inside the kernel.  Padded rows compute
    # garbage that is sliced off below.
    if B_pad != B or in_pad != in_dim:
        x = jnp.pad(x, ((0, B_pad - B), (0, in_pad - in_dim)))

    cbytes = jnp.dtype(cdtype).itemsize
    footprint = _tile_footprint_bytes(
        tm, th, in_pad, out_pad, cbytes,
        jnp.dtype(x.dtype).itemsize, jnp.dtype(odtype).itemsize)
    _, hard_cap = _vmem_budget_bytes()
    vmem_limit = int(max(32 * 1024 * 1024,
                         min(footprint * 5 // 4 + (1 << 20), hard_cap)))

    grid = (grid_b, hid_pad // th)

    out = pl.pallas_call(
        expert_kernel,
        out_shape=jax.ShapeDtypeStruct((B_pad, out_pad), odtype),
        grid=grid,
        in_specs=[
            pl.BlockSpec((tm, in_pad),  lambda i, h: (i, 0)),   # x (not re-DMA'd per h)
            pl.BlockSpec((in_pad, th),  lambda i, h: (0, h)),   # W1 tile
            pl.BlockSpec((1, th),       lambda i, h: (0, h)),   # b1 tile
            pl.BlockSpec((th, out_pad), lambda i, h: (h, 0)),   # W2 tile
            pl.BlockSpec((1, out_pad),  lambda i, h: (0, 0)),   # b2
        ],
        out_specs=pl.BlockSpec((tm, out_pad), lambda i, h: (i, 0)),
        scratch_shapes=[pltpu.VMEM((tm, out_pad), jnp.float32)],
        compiler_params=pltpu.CompilerParams(
            dimension_semantics=("parallel", "arbitrary"),
            vmem_limit_bytes=vmem_limit,
        ),
    )(x, params.w1_t, params.b1, params.w2_t, params.b2)

    return out[:B, :params.out_dim]


def expert_reference(x, w1, b1, w2, b2):
    h = jnp.maximum(
        jnp.dot(x, w1.T, precision=jax.lax.Precision.HIGHEST) + b1, 0.0)
    return jnp.dot(h, w2.T, precision=jax.lax.Precision.HIGHEST) + b2


if __name__ == "__main__":
    def _make_problem(key, B, IN, HID, OUT):
        kx, k1, k2, k3, k4 = jax.random.split(key, 5)
        x = jax.random.normal(kx, (B, IN), dtype=jnp.float32)
        w1 = jax.random.uniform(k1, (HID, IN), jnp.float32, -1., 1.) / jnp.sqrt(IN)
        b1 = jax.random.uniform(k2, (HID,), jnp.float32, -1., 1.) / jnp.sqrt(IN)
        w2 = jax.random.uniform(k3, (OUT, HID), jnp.float32, -1., 1.) / jnp.sqrt(HID)
        b2 = jax.random.uniform(k4, (OUT,), jnp.float32, -1., 1.) / jnp.sqrt(HID)
        return x, w1, b1, w2, b2

    key = jax.random.PRNGKey(0)
    k_a, k_b = jax.random.split(key, 2)

    # Small shapes consistent with the module: batch=8, input=32, hidden=64, out=16.
    x, w1, b1, w2, b2 = _make_problem(k_a, 8, 32, 64, 16)
    y_ref = expert_reference(x, w1, b1, w2, b2)

    # 1) f32 compute path — tight check.
    params_f32 = prepare_expert_params(w1, b1, w2, b2, compute_dtype=jnp.float32)
    y_f32 = jax.block_until_ready(expert_forward(x, params_f32))
    assert y_f32.shape == (8, 16)
    assert jnp.allclose(y_f32, y_ref, atol=1e-4, rtol=1e-4)

    # 2) Default bf16 compute path (f32 accumulation, f32 output) — loose check.
    params_bf16 = prepare_expert_params(w1, b1, w2, b2)
    y_bf16 = jax.block_until_ready(expert_forward(x, params_bf16))
    assert y_bf16.shape == (8, 16) and y_bf16.dtype == x.dtype
    assert jnp.allclose(y_bf16, y_ref, atol=5e-2, rtol=5e-2)

    # 3) Awkward (non-aligned) shapes to exercise batch/lane/hidden padding.
    x2, w1b, b1b, w2b, b2b = _make_problem(k_b, 20, 48, 200, 24)
    y2_ref = expert_reference(x2, w1b, b1b, w2b, b2b)
    params2 = prepare_expert_params(w1b, b1b, w2b, b2b, compute_dtype=jnp.float32)
    y2 = jax.block_until_ready(expert_forward(x2, params2))
    assert y2.shape == (20, 24)
    assert jnp.allclose(y2, y2_ref, atol=1e-4, rtol=1e-4)

    print("KERNEL_OK")
</pallas_src>

<mosaic_0001>
module attributes {stable_mosaic.version = 11 : i64} {
  func.func @expert_kernel(%arg0: i32, %arg1: i32, %arg2: memref<8x128xf32, #tpu.memory_space<vmem>>, %arg3: memref<128x128xf32, #tpu.memory_space<vmem>>, %arg4: memref<1x128xf32, #tpu.memory_space<vmem>>, %arg5: memref<128x128xf32, #tpu.memory_space<vmem>>, %arg6: memref<1x128xf32, #tpu.memory_space<vmem>>, %arg7: memref<8x128xf32, #tpu.memory_space<vmem>>, %arg8: memref<8x128xf32, #tpu.memory_space<vmem>>) attributes {dimension_semantics = [#tpu.dimension_semantics<parallel>, #tpu.dimension_semantics<arbitrary>], iteration_bounds = array<i64: 1, 1>, scalar_prefetch = 0 : i64, scratch_operands = 1 : i64, tpu.core_type = #tpu.core_type<tc>, window_params = [{transform_indices = @transform_0, window_bounds = array<i64: 8, 128>}, {transform_indices = @transform_1, window_bounds = array<i64: 128, 128>}, {transform_indices = @transform_2, window_bounds = array<i64: 1, 128>}, {transform_indices = @transform_3, window_bounds = array<i64: 128, 128>}, {pipeline_mode = #tpu.pipeline_mode<synchronous>, transform_indices = @transform_4, window_bounds = array<i64: 1, 128>}, {transform_indices = @transform_5, window_bounds = array<i64: 8, 128>}]} {
    %c0 = arith.constant 0 : index
    %c0_0 = arith.constant 0 : index
    %0 = vector.load %arg2[%c0, %c0_0] : memref<8x128xf32, #tpu.memory_space<vmem>>, vector<8x128xf32>
    %c0_1 = arith.constant 0 : index
    %c0_2 = arith.constant 0 : index
    %1 = vector.load %arg3[%c0_1, %c0_2] : memref<128x128xf32, #tpu.memory_space<vmem>>, vector<128x128xf32>
    %cst = arith.constant dense<0.000000e+00> : vector<8x128xf32>
    %2 = tpu.matmul %0, %1, %cst {dimension_numbers = #tpu.dot_dimension_numbers<[1], [0], [0], [1], [0, 0, 1, 1], [], []>} : vector<8x128xf32>, vector<128x128xf32>, vector<8x128xf32> -> vector<8x128xf32>
    %c0_3 = arith.constant 0 : index
    %c0_4 = arith.constant 0 : index
    %3 = vector.load %arg4[%c0_3, %c0_4] : memref<1x128xf32, #tpu.memory_space<vmem>>, vector<1x128xf32>
    %4 = vector.broadcast %3 : vector<1x128xf32> to vector<8x128xf32>
    %5 = arith.addf %2, %4 : vector<8x128xf32>
    %cst_5 = arith.constant 0.000000e+00 : f32
    %6 = vector.broadcast %cst_5 : f32 to vector<8x128xf32>
    %7 = arith.maximumf %5, %6 : vector<8x128xf32>
    %c0_i32 = arith.constant 0 : i32
    %8 = arith.cmpi eq, %arg1, %c0_i32 : i32
    %9 = arith.extui %8 : i1 to i32
    %c0_i32_6 = arith.constant 0 : i32
    %10 = arith.cmpi ne, %9, %c0_i32_6 : i32
    scf.if %10 {
      %c0_11 = arith.constant 0 : index
      %c0_12 = arith.constant 0 : index
      %17 = vector.load %arg5[%c0_11, %c0_12] : memref<128x128xf32, #tpu.memory_space<vmem>>, vector<128x128xf32>
      %cst_13 = arith.constant dense<0.000000e+00> : vector<8x128xf32>
      %18 = tpu.matmul %7, %17, %cst_13 {dimension_numbers = #tpu.dot_dimension_numbers<[1], [0], [0], [1], [0, 0, 1, 1], [], []>} : vector<8x128xf32>, vector<128x128xf32>, vector<8x128xf32> -> vector<8x128xf32>
      %c0_14 = arith.constant 0 : index
      %c0_15 = arith.constant 0 : index
      %19 = vector.load %arg8[%c0_14, %c0_15] : memref<8x128xf32, #tpu.memory_space<vmem>>, vector<8x128xf32>
      tpu.vector_store %arg8[%c0_14, %c0_15], %18 {strides = array<i32>} : memref<8x128xf32, #tpu.memory_space<vmem>>, vector<8x128xf32>,
    } else {
    }
    %c0_i32_7 = arith.constant 0 : i32
    %11 = arith.cmpi sgt, %arg1, %c0_i32_7 : i32
    %12 = arith.extui %11 : i1 to i32
    %c0_i32_8 = arith.constant 0 : i32
    %13 = arith.cmpi ne, %12, %c0_i32_8 : i32
    scf.if %13 {
      %c0_11 = arith.constant 0 : index
      %c0_12 = arith.constant 0 : index
      %17 = vector.load %arg8[%c0_11, %c0_12] : memref<8x128xf32, #tpu.memory_space<vmem>>, vector<8x128xf32>
      %c0_13 = arith.constant 0 : index
      %c0_14 = arith.constant 0 : index
      %18 = vector.load %arg5[%c0_13, %c0_14] : memref<128x128xf32, #tpu.memory_space<vmem>>, vector<128x128xf32>
      %cst_15 = arith.constant dense<0.000000e+00> : vector<8x128xf32>
      %19 = tpu.matmul %7, %18, %cst_15 {dimension_numbers = #tpu.dot_dimension_numbers<[1], [0], [0], [1], [0, 0, 1, 1], [], []>} : vector<8x128xf32>, vector<128x128xf32>, vector<8x128xf32> -> vector<8x128xf32>
      %20 = arith.addf %17, %19 : vector<8x128xf32>
      %c0_16 = arith.constant 0 : index
      %c0_17 = arith.constant 0 : index
      %21 = vector.load %arg8[%c0_16, %c0_17] : memref<8x128xf32, #tpu.memory_space<vmem>>, vector<8x128xf32>
      tpu.vector_store %arg8[%c0_16, %c0_17], %20 {strides = array<i32>} : memref<8x128xf32, #tpu.memory_space<vmem>>, vector<8x128xf32>,
    } else {
    }
    %c0_i32_9 = arith.constant 0 : i32
    %14 = arith.cmpi eq, %arg1, %c0_i32_9 : i32
    %15 = arith.extui %14 : i1 to i32
    %c0_i32_10 = arith.constant 0 : i32
    %16 = arith.cmpi ne, %15, %c0_i32_10 : i32
    scf.if %16 {
      %c0_11 = arith.constant 0 : index
      %c0_12 = arith.constant 0 : index
      %17 = vector.load %arg8[%c0_11, %c0_12] : memref<8x128xf32, #tpu.memory_space<vmem>>, vector<8x128xf32>
      %c0_13 = arith.constant 0 : index
      %c0_14 = arith.constant 0 : index
      %18 = vector.load %arg6[%c0_13, %c0_14] : memref<1x128xf32, #tpu.memory_space<vmem>>, vector<1x128xf32>
      %19 = vector.broadcast %18 : vector<1x128xf32> to vector<8x128xf32>
      %20 = arith.addf %17, %19 : vector<8x128xf32>
      %c0_15 = arith.constant 0 : index
      %c0_16 = arith.constant 0 : index
      %21 = vector.load %arg7[%c0_15, %c0_16] : memref<8x128xf32, #tpu.memory_space<vmem>>, vector<8x128xf32>
      tpu.vector_store %arg7[%c0_15, %c0_16], %20 {strides = array<i32>} : memref<8x128xf32, #tpu.memory_space<vmem>>, vector<8x128xf32>,
    } else {
    }
    return
  }
  func.func @transform_0(%arg0: i32, %arg1: i32) -> (i32, i32) {
    %c0_i32 = arith.constant 0 : i32
    %c0_i32_0 = arith.constant 0 : i32
    return %arg0, %c0_i32 : i32, i32
  }
  func.func @transform_1(%arg0: i32, %arg1: i32) -> (i32, i32) {
    %c0_i32 = arith.constant 0 : i32
    %c0_i32_0 = arith.constant 0 : i32
    return %c0_i32, %arg1 : i32, i32
  }
  func.func @transform_2(%arg0: i32, %arg1: i32) -> (i32, i32) {
    %c0_i32 = arith.constant 0 : i32
    %c0_i32_0 = arith.constant 0 : i32
    return %c0_i32, %arg1 : i32, i32
  }
  func.func @transform_3(%arg0: i32, %arg1: i32) -> (i32, i32) {
    %c0_i32 = arith.constant 0 : i32
    %c0_i32_0 = arith.constant 0 : i32
    return %arg1, %c0_i32 : i32, i32
  }
  func.func @transform_4(%arg0: i32, %arg1: i32) -> (i32, i32) {
    %c0_i32 = arith.constant 0 : i32
    %c0_i32_0 = arith.constant 0 : i32
    %c0_i32_1 = arith.constant 0 : i32
    return %c0_i32, %c0_i32_0 : i32, i32
  }
  func.func @transform_5(%arg0: i32, %arg1: i32) -> (i32, i32) {
    %c0_i32 = arith.constant 0 : i32
    %c0_i32_0 = arith.constant 0 : i32
    return %arg0, %c0_i32 : i32, i32
  }
}

</mosaic_0001>

<bundles_post_ra>
// kernel: tpu_custom_call.1
= control target key start
LH: loop header
LB: loop body
LE: loop exit
PB: predicated region body
PF: predicated region fallthrough
CT: control target
= control target key end

     0   :  { %10 = vsyncpa [#allocation4], 0  ;;  %s658_s0 = inlined_call_operand.hbm [shape: f32[8,128], index: 0, kind: input, shape index: {}]   ;;  %s659_s1 = inlined_call_operand.hbm [shape: f32[128,128], index: 1, kind: input, shape index: {}]   ;;  %s660_s2 = inlined_call_operand.vmem [shape: f32[1,128], index: 2, kind: input, shape index: {}]   ;;  %s661_s3 = inlined_call_operand.hbm [shape: f32[128,128], index: 3, kind: input, shape index: {}]   ;;  %s662_s4 = inlined_call_operand.vmem [shape: f32[1,128], index: 4, kind: input, shape index: {}]   ;;  %s663_s5 = inlined_call_operand.hbm [shape: f32[8,128], index: 5, kind: output, shape index: {}]  }
   0x1   :  { %11 = vsyncpa [#allocation7], 0 }
   0x2   :  { %12 = vsyncpa [#allocation5], 0  ;;  %s568_s18 = smov [#allocation6]  }
   0x3   :  { %s28_s19 = sshll.u32 %s568_s18, 4  ;;  %s29_s19 = int_to_ptr.vmem [resolvable:$true] %s28_s19 }
   0x4   :  { %s490_s20 = scalar_lea.vmem %s29_s19, 2048  ;;  %p495_p1 = scmp.lt.s32.totalorder %s29_s19, %s29_s19 }
   0x5   :  { %p491_p0 = scmp.ne.s32.totalorder %s29_s19, %s490_s20  ;;  %p496_p2 = scmp.lt.s32.totalorder %s490_s20, %s490_s20 }
   0x7   :  { %p497_p3 = por %p496_p2, %p495_p1 }
   0x9   :  { %p498_p4 = pnand %p497_p3, %p491_p0 }
   0xb   :  { %501 = shalt.err (!%p498_p4)
}
   0xc   :  { %s569_s21 = smov 128   ;;  %s570_s22 = smov 8  }
   0xd   :  { %34 = dma.hbm_to_vmem [thread:$0]  %s659_s1, 2048, %s29_s19, [#allocation7], %s569_s21, %s569_s21, %s570_s22  }
   0xe   :  { %s571_s25 = smov [#allocation3]   ;;  %s572_s27 = smov [#allocation8]  }
   0xf   :  { %s19_s26 = sshll.u32 %s571_s25, 4  ;;  %s42_s28 = sshll.u32 %s572_s27, 4  ;;  %s20_s26 = int_to_ptr.vmem [resolvable:$true] %s19_s26  ;;  %s43_s28 = int_to_ptr.vmem [resolvable:$true] %s42_s28 }
  0x10   :  { %s510_s29 = scalar_lea.vmem %s20_s26, 128  ;;  %p515_p6 = scmp.lt.s32.totalorder %s20_s26, %s20_s26 }
  0x11   :  { %p511_p5 = scmp.ne.s32.totalorder %s20_s26, %s510_s29  ;;  %p516_p7 = scmp.lt.s32.totalorder %s510_s29, %s510_s29 }
  0x13   :  { %p517_p8 = por %p516_p7, %p515_p6 }
  0x15   :  { %p518_p9 = pnand %p517_p8, %p511_p5 }
  0x17   :  { %521 = shalt.err (!%p518_p9)
}
  0x18   :  { %22 = dma.hbm_to_vmem [thread:$0]  %s658_s0, 128, %s20_s26, [#allocation4]  }
  0x19   :  { %s530_s7 = scalar_lea.vmem %s43_s28, 2048  ;;  %p535_p11 = scmp.lt.s32.totalorder %s43_s28, %s43_s28 }
  0x1a   :  { %p531_p10 = scmp.ne.s32.totalorder %s43_s28, %s530_s7  ;;  %p536_p12 = scmp.lt.s32.totalorder %s530_s7, %s530_s7 }
  0x1c   :  { %p537_p13 = por %p536_p12, %p535_p11 }
  0x1e   :  { %p538_p0 = pnand %p537_p13, %p531_p10 }
  0x20   :  { %541 = shalt.err (!%p538_p0)
}
  0x21   :  { %48 = dma.hbm_to_vmem [thread:$0]  %s661_s3, 2048, %s43_s28, [#allocation7], %s569_s21, %s569_s21, %s570_s22  }
  0x22   :  { %562 = dma.done.wait [#allocation4], 128  }
  0x23   :  { %563 = vsyncadd [#allocation4], 4294967168 }
  0x24   :  { %564 = dma.done.wait [#allocation7], 4096  }
  0x25   :  { %565 = vsyncadd [#allocation7], 4294963200  ;;  %v573_v0 = vmov 0.0   ;;  %vm574_vm0 = vmmov 0   ;;  %v76_v1 = vld [vmem:[#allocation6 + $0x78] sm:$0xff]  ;;  %v75_v2 = vld [vmem:[#allocation6 + $0x70] sm:$0xff] }
  0x26   :  { %404 = vmatprep.subr.mxu0 %v573_v0  ;;  %436 = vmatprep.mubr.msk.f32.mxu0 %vm574_vm0, %v573_v0  ;;  %v74_v3 = vld [vmem:[#allocation6 + $0x68] sm:$0xff]  ;;  %v73_v4 = vld [vmem:[#allocation6 + $0x60] sm:$0xff]  ;;  %v174_v5 = vld [vmem:[#allocation8 + $0x78] sm:$0xff]  ;;  %s575_s11 = smov [#allocation9]  }
  0x27   :  { %439 = vmatprep.subr.mxu1 %v573_v0  ;;  %471 = vmatprep.mubr.msk.f32.mxu1 %vm574_vm0, %v573_v0  ;;  %v72_v6 = vld [vmem:[#allocation6 + $0x58] sm:$0xff]  ;;  %v173_v7 = vld [vmem:[#allocation8 + $0x70] sm:$0xff]  ;;  %v172_v8 = vld [vmem:[#allocation8 + $0x68] sm:$0xff]  ;;  %s358_s12 = sshll.u32 %s575_s11, 4  ;;  %s359_s12 = int_to_ptr.vmem [resolvable:$true] %s358_s12 }
  0x28   :  { %405 = vmatpush3.msra.mxu0 %v76_v1  ;;  %440 = vmatpush3.msra.mxu1 %v174_v5  ;;  %v71_v9 = vld [vmem:[#allocation6 + $0x50] sm:$0xff]  ;;  %v171_v10 = vld [vmem:[#allocation8 + $0x60] sm:$0xff]  ;;  %v70_v11 = vld [vmem:[#allocation6 + $0x48] sm:$0xff]  ;;  %s542_s13 = scalar_lea.vmem %s359_s12, 128  ;;  %p547_p2 = scmp.lt.s32.totalorder %s359_s12, %s359_s12 }
  0x29   :  { %406 = vmatprep.subr.mxu0 %v573_v0  ;;  %441 = vmatprep.subr.mxu1 %v573_v0  ;;  %v170_v12 = vld [vmem:[#allocation8 + $0x58] sm:$0xff]  ;;  %v69_v13 = vld [vmem:[#allocation6 + $0x40] sm:$0xff]  ;;  %v169_v14 = vld [vmem:[#allocation8 + $0x50] sm:$0xff]  ;;  %p543_p1 = scmp.ne.s32.totalorder %s359_s12, %s542_s13  ;;  %p548_p3 = scmp.lt.s32.totalorder %s542_s13, %s542_s13 }
  0x2a   :  { %407 = vmatpush3.msra.mxu0 %v75_v2  ;;  %442 = vmatpush3.msra.mxu1 %v173_v7  ;;  %v68_v15 = vld [vmem:[#allocation6 + $0x38] sm:$0xff]  ;;  %v168_v16 = vld [vmem:[#allocation8 + $0x48] sm:$0xff]  ;;  %v67_v17 = vld [vmem:[#allocation6 + $0x30] sm:$0xff] }
  0x2b   :  { %408 = vmatprep.subr.mxu0 %v573_v0  ;;  %443 = vmatprep.subr.mxu1 %v573_v0  ;;  %v167_v18 = vld [vmem:[#allocation8 + $0x40] sm:$0xff]  ;;  %v66_v19 = vld [vmem:[#allocation6 + $0x28] sm:$0xff]  ;;  %v166_v20 = vld [vmem:[#allocation8 + $0x38] sm:$0xff]  ;;  %p549_p4 = por %p548_p3, %p547_p2 }
  0x2c   :  { %409 = vmatpush3.msra.mxu0 %v74_v3  ;;  %444 = vmatpush3.msra.mxu1 %v172_v8  ;;  %v65_v21 = vld [vmem:[#allocation6 + $0x20] sm:$0xff]  ;;  %v165_v22 = vld [vmem:[#allocation8 + $0x30] sm:$0xff]  ;;  %v64_v23 = vld [vmem:[#allocation6 + $0x18] sm:$0xff] }
  0x2d   :  { %410 = vmatprep.subr.mxu0 %v573_v0  ;;  %445 = vmatprep.subr.mxu1 %v573_v0  ;;  %v164_v24 = vld [vmem:[#allocation8 + $0x28] sm:$0xff]  ;;  %v63_v25 = vld [vmem:[#allocation6 + $0x10] sm:$0xff]  ;;  %v163_v26 = vld [vmem:[#allocation8 + $0x20] sm:$0xff]  ;;  %p550_p5 = pnand %p549_p4, %p543_p1 }
  0x2e   :  { %411 = vmatpush3.msra.mxu0 %v73_v4  ;;  %446 = vmatpush3.msra.mxu1 %v171_v10  ;;  %v62_v27 = vld [vmem:[#allocation6 + $0x8] sm:$0xff]  ;;  %v162_v28 = vld [vmem:[#allocation8 + $0x18] sm:$0xff]  ;;  %v61_v29 = vld [vmem:[#allocation6] sm:$0xff] }
  0x2f   :  { %412 = vmatprep.subr.mxu0 %v573_v0  ;;  %447 = vmatprep.subr.mxu1 %v573_v0  ;;  %v60_v30 = vld [vmem:[#allocation3] sm:$0xff]  ;;  %v161_v31 = vld [vmem:[#allocation8 + $0x10] sm:$0xff]  ;;  %v160_v32 = vld [vmem:[#allocation8 + $0x8] sm:$0xff] }
  0x30   :  { %413 = vmatpush3.msra.mxu0 %v72_v6  ;;  %448 = vmatpush3.msra.mxu1 %v170_v12  ;;  %v159_v33 = vld [vmem:[#allocation8] sm:$0xff]  ;;  %v368_v34 = vld [vmem:[%s660_s2] ss:$0 sm:$0xff] }
  0x31   :  { %414 = vmatprep.subr.mxu0 %v573_v0  ;;  %449 = vmatprep.subr.mxu1 %v573_v0  ;;  %v369_v39 = vld [vmem:[%s662_s4] ss:$0 sm:$0xff] }
  0x32   :  { %415 = vmatpush3.msra.mxu0 %v71_v9  ;;  %450 = vmatpush3.msra.mxu1 %v169_v14 }
  0x33   :  { %416 = vmatprep.subr.mxu0 %v573_v0  ;;  %451 = vmatprep.subr.mxu1 %v573_v0 }
  0x34   :  { %417 = vmatpush3.msra.mxu0 %v70_v11  ;;  %452 = vmatpush3.msra.mxu1 %v168_v16 }
  0x35   :  { %418 = vmatprep.subr.mxu0 %v573_v0  ;;  %453 = vmatprep.subr.mxu1 %v573_v0 }
  0x36   :  { %419 = vmatpush3.msra.mxu0 %v69_v13  ;;  %454 = vmatpush3.msra.mxu1 %v167_v18 }
  0x37   :  { %420 = vmatprep.subr.mxu0 %v573_v0  ;;  %455 = vmatprep.subr.mxu1 %v573_v0 }
  0x38   :  { %421 = vmatpush3.msra.mxu0 %v68_v15  ;;  %456 = vmatpush3.msra.mxu1 %v166_v20 }
  0x39   :  { %422 = vmatprep.subr.mxu0 %v573_v0  ;;  %457 = vmatprep.subr.mxu1 %v573_v0 }
  0x3a   :  { %423 = vmatpush3.msra.mxu0 %v67_v17  ;;  %458 = vmatpush3.msra.mxu1 %v165_v22 }
  0x3b   :  { %424 = vmatprep.subr.mxu0 %v573_v0  ;;  %459 = vmatprep.subr.mxu1 %v573_v0 }
  0x3c   :  { %425 = vmatpush3.msra.mxu0 %v66_v19  ;;  %460 = vmatpush3.msra.mxu1 %v164_v24 }
  0x3d   :  { %426 = vmatprep.subr.mxu0 %v573_v0  ;;  %461 = vmatprep.subr.mxu1 %v573_v0 }
  0x3e   :  { %427 = vmatpush3.msra.mxu0 %v65_v21  ;;  %462 = vmatpush3.msra.mxu1 %v163_v26 }
  0x3f   :  { %428 = vmatprep.subr.mxu0 %v573_v0  ;;  %463 = vmatprep.subr.mxu1 %v573_v0 }
  0x40   :  { %429 = vmatpush3.msra.mxu0 %v64_v23  ;;  %464 = vmatpush3.msra.mxu1 %v162_v28 }
  0x41   :  { %430 = vmatprep.subr.mxu0 %v573_v0  ;;  %465 = vmatprep.subr.mxu1 %v573_v0 }
  0x42   :  { %431 = vmatpush3.msra.mxu0 %v63_v25  ;;  %466 = vmatpush3.msra.mxu1 %v161_v31 }
  0x43   :  { %432 = vmatprep.subr.mxu0 %v573_v0  ;;  %467 = vmatprep.subr.mxu1 %v573_v0 }
  0x44   :  { %433 = vmatpush3.msra.mxu0 %v62_v27  ;;  %468 = vmatpush3.msra.mxu1 %v160_v32 }
  0x45   :  { %434 = vmatprep.subr.mxu0 %v573_v0  ;;  %469 = vmatprep.subr.mxu1 %v573_v0 }
  0x46   :  { %435 = vmatpush3.msra.mxu0 %v61_v29  ;;  %470 = vmatpush3.msra.mxu1 %v159_v33 }
  0x47   :  { %437 = vmatmul.mubr.f32.vlgmr.msra.gmra.mxu0 %v60_v30 }
 0x107   :  { %v150_v35 = vpop.f32.mrf.mxu0 }
 0x108   :  { %v151_v36 = vadd.f32 %v368_v34, %v150_v35 }
 0x109   :  { %v438_v37 = vpop.f32.mrf.mxu0 }
 0x10a   :  { %v154_v38 = vmax.f32 %v151_v36, 0.0 }
 0x10c   :  { %472 = vmatmul.mubr.f32.vlgmr.msra.gmra.mxu1 %v154_v38 }
 0x1cc   :  { %v241_v40 = vpop.f32.mrf.mxu1 }
 0x1cd   :  { %v350_v41 = vadd.f32 %v369_v39, %v241_v40 }
 0x1ce   :  { %v473_v42 = vpop.f32.mrf.mxu1 }
 0x1cf   :  { %351 = vst [vmem:[#allocation9] sm:$0xff] %v350_v41 }
 0x1d0   :  { %553 = shalt.err (!%p550_p5)
}
 0x1d1   :  { %361 = dma.vmem_to_hbm [thread:$0]  %s359_s12, 128, %s663_s5, [#allocation5]  }
 0x1d2   :  { %566 = dma.done.wait [#allocation5], 128  }
 0x1d3   :  { %567 = vsyncadd [#allocation5], 4294967168 }
 0x1d4   :  { %365 = vsyncpa [#allocation4], 1 }
 0x1d5   :  { %366 = vsyncpa [#allocation7], 1 }
 0x1d6   :  { %367 = vsyncpa [#allocation5], 1 }

</bundles_post_ra>
